<compile_context>
chip_gen: v6e
topology: v6e:2x2x1
jax: 0.10.0
libtpu: 0.0.40
codegen_flags: <defaults>
</compile_context>

<pallas_src>
import math

import jax
import jax.numpy as jnp
import numpy as np
from jax.experimental import pallas as pl
from jax.experimental.pallas import tpu as pltpu

_LANE = 128   # lane tile (minor dim)
_SUB = 8      # sublane tile (second-minor dim)


def _round_up(v: int, m: int) -> int:
    return -(-v // m) * m


def _binomial_row(filter_size: int) -> np.ndarray:
    """Normalized 1-D half of the separable binomial (approx. gaussian) filter."""
    row = np.array([math.comb(filter_size - 1, j) for j in range(filter_size)],
                   dtype=np.float32)
    return row / row.sum()


def _blur_padding(filter_size: int):
    if filter_size % 2 == 0:
        return (filter_size - 1) // 2, filter_size // 2
    return filter_size // 2, filter_size // 2


def _pick_tc(NC: int, H: int, W: int, in_bytes: int, out_bytes: int, pad2: int,
             budget_bytes: int = 10 * 1024 * 1024) -> int:
    """Largest divisor of NC whose per-step VMEM footprint fits the budget."""
    Hr, Wr = _round_up(H, _SUB), _round_up(W, _LANE)
    per_plane = (
        2 * Hr * Wr * in_bytes                              # input block (dbl-buffered)
        + 2 * Hr * Wr * out_bytes                           # output block (dbl-buffered)
        + Hr * _round_up(_LANE + W + pad2, _LANE) * 4       # W-padded f32 scratch
        + _round_up(_SUB + H + pad2, _SUB) * Wr * 4         # H-padded f32 scratch
        + 6 * Hr * Wr * 4                                   # live f32 temporaries (fudge)
    )
    cap = int(max(1, min(NC, budget_bytes // per_plane)))
    divs = [d for d in range(1, NC + 1) if NC % d == 0 and d <= cap]
    tc = max(divs)
    if NC // tc < 2:               # prefer grid >= 2 so v7x megacore can shard it
        multi = [d for d in divs if NC // d >= 2]
        if multi:
            tc = max(multi)
    return tc


def _make_blur_call(NC: int, H: int, W: int, filter_size: int, dtype):
    fs = filter_size
    pad1, pad2 = _blur_padding(fs)
    r = [float(v) for v in _binomial_row(fs)]        # compile-time constants
    in_bytes = out_bytes = np.dtype(dtype).itemsize
    TC = _pick_tc(NC, H, W, in_bytes, out_bytes, pad2)
    grid = NC // TC

    wp_width = _LANE + W + pad2          # zero-padded-in-W scratch width
    hp_height = _SUB + H + pad2          # zero-padded-in-H scratch height

    def kernel(x_ref, o_ref, wpad_ref, hpad_ref):
        # ---------- horizontal (along W) pass ----------
        # zero scratch every step (safe under megacore sharding), then write the
        # interior at the tile-aligned lane offset _LANE.
        wpad_ref[...] = jnp.zeros_like(wpad_ref)
        wpad_ref[:, :, _LANE:_LANE + W] = x_ref[...].astype(jnp.float32)
        base = _LANE - pad1
        h = r[0] * wpad_ref[:, :, base:base + W]
        for j in range(1, fs):
            h = h + r[j] * wpad_ref[:, :, base + j:base + j + W]

        # ---------- vertical (along H) pass ----------
        hpad_ref[...] = jnp.zeros_like(hpad_ref)
        hpad_ref[:, _SUB:_SUB + H, :] = h
        vbase = _SUB - pad1
        acc = r[0] * hpad_ref[:, vbase:vbase + H, :]
        for i in range(1, fs):
            acc = acc + r[i] * hpad_ref[:, vbase + i:vbase + i + H, :]

        o_ref[...] = acc.astype(o_ref.dtype)

    cost = pl.CostEstimate(
        flops=2 * (2 * fs) * NC * H * W,          # mul+add per tap, 2*fs taps/elem
        transcendentals=0,
        bytes_accessed=NC * H * W * (in_bytes + out_bytes))

    return pl.pallas_call(
        kernel,
        out_shape=jax.ShapeDtypeStruct((NC, H, W), dtype),
        grid_spec=pltpu.PrefetchScalarGridSpec(
            num_scalar_prefetch=0,
            grid=(grid,),
            in_specs=[pl.BlockSpec((TC, H, W), lambda i: (i, 0, 0))],
            out_specs=pl.BlockSpec((TC, H, W), lambda i: (i, 0, 0)),
            scratch_shapes=[
                pltpu.VMEM((TC, H, wp_width), jnp.float32),
                pltpu.VMEM((TC, hp_height, W), jnp.float32),
            ],
        ),
        compiler_params=pltpu.CompilerParams(
            dimension_semantics=("parallel",),
            vmem_limit_bytes=32 * 1024 * 1024,
        ),
        cost_estimate=cost,
    )


def blur(x: jax.Array, filter_size: int = 4) -> jax.Array:
    """Pallas equivalent of storch Blur.forward. x: (N, C, H, W) -> same shape."""
    N, C, H, W = x.shape
    call = _make_blur_call(N * C, H, W, filter_size, x.dtype)
    out_flat = call(x.reshape(N * C, H, W))
    return out_flat.reshape(N, C, H, W)


def _reference_blur(x: jax.Array, filter_size: int = 4) -> jax.Array:
    """Plain-JAX depthwise conv reference (mirrors F.conv2d with groups=C)."""
    N, C, H, W = x.shape
    pad1, pad2 = _blur_padding(filter_size)
    row = np.array([math.comb(filter_size - 1, j) for j in range(filter_size)],
                   dtype=np.float32)
    filt2d = np.outer(row, row)
    filt2d /= filt2d.sum()
    w = jnp.broadcast_to(jnp.asarray(filt2d)[None, None],
                         (C, 1, filter_size, filter_size))
    xp = jnp.pad(x, ((0, 0), (0, 0), (pad1, pad2), (pad1, pad2)))
    return jax.lax.conv_general_dilated(
        xp, w, window_strides=(1, 1), padding="VALID",
        dimension_numbers=("NCHW", "OIHW", "NCHW"),
        feature_group_count=C)


if __name__ == "__main__":
    key = jax.random.PRNGKey(0)
    N, C, H, W = 2, 4, 16, 16
    x = jax.random.normal(key, (N, C, H, W), dtype=jnp.float32)

    out = jax.block_until_ready(blur(x, filter_size=4))
    ref = jax.block_until_ready(_reference_blur(x, filter_size=4))

    assert out.shape == (N, C, H, W)
    np.testing.assert_allclose(np.asarray(out), np.asarray(ref),
                               rtol=1e-5, atol=1e-5)
    print("KERNEL_OK")
</pallas_src>

<mosaic_0001>
module attributes {stable_mosaic.version = 11 : i64} {
  func.func @kernel(%arg0: i32, %arg1: memref<4x16x16xf32, #tpu.memory_space<vmem>>, %arg2: memref<4x16x16xf32, #tpu.memory_space<vmem>>, %arg3: memref<4x16x146xf32, #tpu.memory_space<vmem>>, %arg4: memref<4x26x16xf32, #tpu.memory_space<vmem>>) attributes {dimension_semantics = [#tpu.dimension_semantics<parallel>], iteration_bounds = array<i64: 2>, scalar_prefetch = 0 : i64, scratch_operands = 2 : i64, tpu.core_type = #tpu.core_type<tc>, window_params = [{transform_indices = @transform_0, window_bounds = array<i64: 4, 16, 16>}, {transform_indices = @transform_1, window_bounds = array<i64: 4, 16, 16>}]} {
    %cst = arith.constant 0.000000e+00 : f32
    %0 = vector.broadcast %cst : f32 to vector<4x16x146xf32>
    %c0 = arith.constant 0 : index
    %c0_0 = arith.constant 0 : index
    %c0_1 = arith.constant 0 : index
    %1 = vector.load %arg3[%c0, %c0_0, %c0_1] : memref<4x16x146xf32, #tpu.memory_space<vmem>>, vector<4x16x146xf32>
    tpu.vector_store %arg3[%c0, %c0_0, %c0_1], %0 {strides = array<i32>} : memref<4x16x146xf32, #tpu.memory_space<vmem>>, vector<4x16x146xf32>,
    %c0_2 = arith.constant 0 : index
    %c0_3 = arith.constant 0 : index
    %c0_4 = arith.constant 0 : index
    %2 = vector.load %arg1[%c0_2, %c0_3, %c0_4] : memref<4x16x16xf32, #tpu.memory_space<vmem>>, vector<4x16x16xf32>
    %c0_5 = arith.constant 0 : index
    %c0_6 = arith.constant 0 : index
    %c128 = arith.constant 128 : index
    %3 = vector.load %arg3[%c0_5, %c0_6, %c128] : memref<4x16x146xf32, #tpu.memory_space<vmem>>, vector<4x16x16xf32>
    tpu.vector_store %arg3[%c0_5, %c0_6, %c128], %2 {strides = array<i32>} : memref<4x16x146xf32, #tpu.memory_space<vmem>>, vector<4x16x16xf32>,
    %c0_7 = arith.constant 0 : index
    %c0_8 = arith.constant 0 : index
    %c127 = arith.constant 127 : index
    %4 = vector.load %arg3[%c0_7, %c0_8, %c127] : memref<4x16x146xf32, #tpu.memory_space<vmem>>, vector<4x16x16xf32>
    %cst_9 = arith.constant 1.250000e-01 : f32
    %5 = vector.broadcast %cst_9 : f32 to vector<4x16x16xf32>
    %6 = arith.mulf %5, %4 : vector<4x16x16xf32>
    %c0_10 = arith.constant 0 : index
    %c0_11 = arith.constant 0 : index
    %c128_12 = arith.constant 128 : index
    %7 = vector.load %arg3[%c0_10, %c0_11, %c128_12] : memref<4x16x146xf32, #tpu.memory_space<vmem>>, vector<4x16x16xf32>
    %cst_13 = arith.constant 3.750000e-01 : f32
    %8 = vector.broadcast %cst_13 : f32 to vector<4x16x16xf32>
    %9 = arith.mulf %8, %7 : vector<4x16x16xf32>
    %10 = arith.addf %6, %9 : vector<4x16x16xf32>
    %c0_14 = arith.constant 0 : index
    %c0_15 = arith.constant 0 : index
    %c129 = arith.constant 129 : index
    %11 = vector.load %arg3[%c0_14, %c0_15, %c129] : memref<4x16x146xf32, #tpu.memory_space<vmem>>, vector<4x16x16xf32>
    %cst_16 = arith.constant 3.750000e-01 : f32
    %12 = vector.broadcast %cst_16 : f32 to vector<4x16x16xf32>
    %13 = arith.mulf %12, %11 : vector<4x16x16xf32>
    %14 = arith.addf %10, %13 : vector<4x16x16xf32>
    %c0_17 = arith.constant 0 : index
    %c0_18 = arith.constant 0 : index
    %c130 = arith.constant 130 : index
    %15 = vector.load %arg3[%c0_17, %c0_18, %c130] : memref<4x16x146xf32, #tpu.memory_space<vmem>>, vector<4x16x16xf32>
    %cst_19 = arith.constant 1.250000e-01 : f32
    %16 = vector.broadcast %cst_19 : f32 to vector<4x16x16xf32>
    %17 = arith.mulf %16, %15 : vector<4x16x16xf32>
    %18 = arith.addf %14, %17 : vector<4x16x16xf32>
    %cst_20 = arith.constant 0.000000e+00 : f32
    %19 = vector.broadcast %cst_20 : f32 to vector<4x26x16xf32>
    %c0_21 = arith.constant 0 : index
    %c0_22 = arith.constant 0 : index
    %c0_23 = arith.constant 0 : index
    %20 = vector.load %arg4[%c0_21, %c0_22, %c0_23] : memref<4x26x16xf32, #tpu.memory_space<vmem>>, vector<4x26x16xf32>
    tpu.vector_store %arg4[%c0_21, %c0_22, %c0_23], %19 {strides = array<i32>} : memref<4x26x16xf32, #tpu.memory_space<vmem>>, vector<4x26x16xf32>,
    %c0_24 = arith.constant 0 : index
    %c8 = arith.constant 8 : index
    %c0_25 = arith.constant 0 : index
    %21 = vector.load %arg4[%c0_24, %c8, %c0_25] : memref<4x26x16xf32, #tpu.memory_space<vmem>>, vector<4x16x16xf32>
    tpu.vector_store %arg4[%c0_24, %c8, %c0_25], %18 {strides = array<i32>} : memref<4x26x16xf32, #tpu.memory_space<vmem>>, vector<4x16x16xf32>,
    %c0_26 = arith.constant 0 : index
    %c7 = arith.constant 7 : index
    %c0_27 = arith.constant 0 : index
    %22 = vector.load %arg4[%c0_26, %c7, %c0_27] : memref<4x26x16xf32, #tpu.memory_space<vmem>>, vector<4x16x16xf32>
    %cst_28 = arith.constant 1.250000e-01 : f32
    %23 = vector.broadcast %cst_28 : f32 to vector<4x16x16xf32>
    %24 = arith.mulf %23, %22 : vector<4x16x16xf32>
    %c0_29 = arith.constant 0 : index
    %c8_30 = arith.constant 8 : index
    %c0_31 = arith.constant 0 : index
    %25 = vector.load %arg4[%c0_29, %c8_30, %c0_31] : memref<4x26x16xf32, #tpu.memory_space<vmem>>, vector<4x16x16xf32>
    %cst_32 = arith.constant 3.750000e-01 : f32
    %26 = vector.broadcast %cst_32 : f32 to vector<4x16x16xf32>
    %27 = arith.mulf %26, %25 : vector<4x16x16xf32>
    %28 = arith.addf %24, %27 : vector<4x16x16xf32>
    %c0_33 = arith.constant 0 : index
    %c9 = arith.constant 9 : index
    %c0_34 = arith.constant 0 : index
    %29 = vector.load %arg4[%c0_33, %c9, %c0_34] : memref<4x26x16xf32, #tpu.memory_space<vmem>>, vector<4x16x16xf32>
    %cst_35 = arith.constant 3.750000e-01 : f32
    %30 = vector.broadcast %cst_35 : f32 to vector<4x16x16xf32>
    %31 = arith.mulf %30, %29 : vector<4x16x16xf32>
    %32 = arith.addf %28, %31 : vector<4x16x16xf32>
    %c0_36 = arith.constant 0 : index
    %c10 = arith.constant 10 : index
    %c0_37 = arith.constant 0 : index
    %33 = vector.load %arg4[%c0_36, %c10, %c0_37] : memref<4x26x16xf32, #tpu.memory_space<vmem>>, vector<4x16x16xf32>
    %cst_38 = arith.constant 1.250000e-01 : f32
    %34 = vector.broadcast %cst_38 : f32 to vector<4x16x16xf32>
    %35 = arith.mulf %34, %33 : vector<4x16x16xf32>
    %36 = arith.addf %32, %35 : vector<4x16x16xf32>
    %c0_39 = arith.constant 0 : index
    %c0_40 = arith.constant 0 : index
    %c0_41 = arith.constant 0 : index
    %37 = vector.load %arg2[%c0_39, %c0_40, %c0_41] : memref<4x16x16xf32, #tpu.memory_space<vmem>>, vector<4x16x16xf32>
    tpu.vector_store %arg2[%c0_39, %c0_40, %c0_41], %36 {strides = array<i32>} : memref<4x16x16xf32, #tpu.memory_space<vmem>>, vector<4x16x16xf32>,
    return
  }
  func.func @transform_0(%arg0: i32) -> (i32, i32, i32) {
    %c0_i32 = arith.constant 0 : i32
    %c0_i32_0 = arith.constant 0 : i32
    %c0_i32_1 = arith.constant 0 : i32
    return %arg0, %c0_i32, %c0_i32_0 : i32, i32, i32
  }
  func.func @transform_1(%arg0: i32) -> (i32, i32, i32) {
    %c0_i32 = arith.constant 0 : i32
    %c0_i32_0 = arith.constant 0 : i32
    %c0_i32_1 = arith.constant 0 : i32
    return %arg0, %c0_i32, %c0_i32_0 : i32, i32, i32
  }
}

</mosaic_0001>

<bundles_post_ra>
// kernel: tpu_custom_call.1
= control target key start
LH: loop header
LB: loop body
LE: loop exit
PB: predicated region body
PF: predicated region fallthrough
CT: control target
= control target key end

     0   :  { %6 = vsyncpa [#allocation5], 0  ;;  %s1095_s0 = inlined_call_operand.hbm [shape: f32[8,16,16], index: 0, kind: input, shape index: {}]   ;;  %s1096_s1 = inlined_call_operand.hbm [shape: f32[8,16,16], index: 1, kind: output, shape index: {}]  }
   0x1   :  { %8 = vsyncpa [#allocation5 + $0x1], 0 }
   0x2   :  { %9 = vsyncpa [#allocation6], 0 }
   0x3   :  { %11 = vsyncpa [#allocation6 + $0x1], 0  ;;  %s812_s6 = smov 0   ;;  %s814_s7 = smov 0  }
   0x4   :  { %s816_s8 = smov 0   ;;  %s818_s9 = smov 0  }
   0x5 LB: > { %s833_s10 = sadd.s32 4294967295, %s789_s9   ;;  %s622_s11 = sadd.s32 4294967294, %s789_s9   ;;  %s789_s9 = sphi %s818_s9, %s1111_s9   ;;  %s785_s8 = sphi %s816_s8, %s1110_s8   ;;  %s781_s7 = sphi %s814_s7, %s1109_s7   ;;  %s777_s6 = sphi %s812_s6, %s1108_s6  }
   0x6   : > { %s837_s12 = sadd.s32 1, %s789_s9   ;;  %s24_s13 = sadd.s32 1, %s785_s8 }
   0x7   : > { %s21_s14 = ssub.s32 %s789_s9, %s837_s12  ;;  %p31_p0 = scmp.ne.s32.totalorder %s785_s8, %s781_s7 }
   0x8   : > { %p22_p1 = scmp.eq.s32.totalorder %s21_s14, 0  ;;  %p32_p2 = scmp.eq.s32.totalorder %s789_s9, 0 }
   0x9   : > { %p37_p3 = scmp.ne.s32.totalorder %s781_s7, %s777_s6  ;;  %p38_p4 = scmp.eq.s32.totalorder %s833_s10, 0 }
   0xa   : > { %s849_s15 = scalar_select %p22_p1, %s785_s8, %s24_s13  }
   0xb   : > { %p851_p5 = por %p32_p2, %p31_p0  ;;  %p855_p6 = por %p38_p4, %p37_p3 }
   0xc   : > { %p61_p7 = scmp.eq.s32.totalorder %s833_s10, 1  ;;  %p67_p8 = scmp.eq.s32.totalorder %s622_s11, 1 }
   0xd   : > { %s1100_s17 = scalar_select %p855_p6, 1, 0 }
   0xe   : > { %p654_p10 = scmp.lt.s32.totalorder %s789_s9, 2  ;;  %p862_p11 = por %p61_p7, %p31_p0 }
   0xf   : > { %p866_p12 = por %p67_p8, %p37_p3  ;;  %s87_s20 = sand.u32 1, %s785_s8  }
  0x10   : > { %s1101_s18 = scalar_select %p862_p11, 1, 0 }
  0x11   : > { %s1102_s19 = scalar_select %p866_p12, 1, 0 }
  0x12   : > { %s639_s21 = sshll.u32 %s789_s9, 10  ;;  %s625_s22 = sshll.u32 %s87_s20, 6 }
  0x13   : > { %s875_s25 = scalar_lea.hbm %s1095_s0, %s639_s21  ;;  %s91_s26 = scalar_lea.vmem [#allocation4], %s625_s22 }
  0x14   : > { %s99_s27 = sshll.u32 %s91_s26, 4  ;;  %p879_p13 = pnand %p654_p10, %p851_p5  ;;  %s883_s27 = int_to_ptr.vmem [resolvable:$true] %s99_s27 }
  0x15   : > { %s885_s29 = scalar_lea.sflag [#allocation5], %s87_s20  ;;  %s697_s30 = scalar_lea.hbm %s875_s25, 1024 }
  0x16   : > { %p698_p0 = scmp.ne.s32.totalorder %s875_s25, %s697_s30  ;;  %p699_p1 = pneg %p879_p13 }
  0x17   : > { %s702_s4 = scalar_lea.hbm %s1095_s0, 2048  ;;  %p703_p4 = scmp.lt.s32.totalorder %s875_s25, %s1095_s0 }
  0x18   : > { %p700_p2 = pnand %p699_p1, %p698_p0  ;;  %p704_p5 = scmp.lt.s32.totalorder %s702_s4, %s697_s30 }
  0x1a   : > { %p701_p3 = pneg %p700_p2  ;;  %p705_p7 = por %p704_p5, %p703_p4 }
  0x1c   : > { %p706_p8 = pnand %p705_p7, %p701_p3 }
  0x1e   : > { %709 = shalt.err (!%p706_p8)
}
  0x1f   : > { %s710_s13 = scalar_lea.vmem %s883_s27, 1024  ;;  %s791_s14 = smov [#allocation4]  }
  0x20   : > { %p711_p10 = scmp.ne.s32.totalorder %s883_s27, %s710_s13  ;;  %s715_s16 = sshll.u32 %s791_s14, 4  ;;  %s716_s16 = int_to_ptr.vmem [resolvable:$false] %s715_s16 }
  0x21   : > { %s717_s20 = scalar_lea.vmem %s716_s16, 2048  ;;  %p718_p2 = scmp.lt.s32.totalorder %s883_s27, %s716_s16 }
  0x22   : > { %p713_p9 = pnand %p711_p10, %p699_p1  ;;  %p719_p12 = scmp.lt.s32.totalorder %s717_s20, %s710_s13 }
  0x24   : > { %p714_p0 = pneg %p713_p9  ;;  %p720_p11 = por %p719_p12, %p718_p2 }
  0x26   : > { %p721_p6 = pnand %p720_p11, %p714_p0 }
  0x28   : > { %724 = shalt.err (!%p721_p6)
}
  0x29   : > { %s792_s21 = smov 128   ;;  %s793_s22 = smov 8  }
  0x2a   : > { %649 = dma.hbm_to_vmem [thread:$0]  (!%p879_p13), %s875_s25, 1024, %s883_s27, %s885_s29, %s792_s21, %s792_s21, %s793_s22  }
  0x2b   : > { %p629_p9 = scmp.ge.s32.totalorder %s789_s9, 1  ;;  %p107_p1 = scmp.lt.s32.totalorder %s789_s9, 3 }
  0x2d   : > { %p108_p3 = pnand %p629_p9, %p107_p1 }
  0x2e   : > { %s909_s23 = sand.u32 (!%p108_p3), 1, %s781_s7   ;;  %p1104_p6 = scmp.ne.s32.totalorder (!%p108_p3), %s1100_s17, 0 }
  0x2f   : > { %111 = sbr.rel (%p108_p3) target bundleno = 399 (0x18f), region = 24  ;;  %s630_s24 = sshll.u32 (!%p108_p3), %s909_s23, 6 }
  0x30   : > { %s114_s26 = scalar_lea.sflag (!%p108_p3), [#allocation5], %s909_s23  ;;  %s915_s30 = scalar_lea.vmem (!%p108_p3), [#allocation4], %s630_s24 }
  0x34   : > { %768 = dma.done.wait (%p1104_p6), %s114_s26, 1024  }
  0x35   : > { %770 = vsyncadd (%p1104_p6), %s114_s26, 4294966272  ;;  %vm139_vm0 = vcmask 146432   ;;  %vm163_vm1 = vcmask 130048   ;;  %v794_v0 = vmov 0.0   ;;  %v157_v1 = vld [vmem:[%s915_s30 + $0x10] sm:$0xff]  ;;  %v155_v2 = vld [vmem:[%s915_s30] sm:$0xff] }
  0x36   : > { %144 = vst.msk [vmem:[#allocation2 + $0x28] sm:$0xff] %vm139_vm0, %v794_v0  ;;  %140 = vst.msk [vmem:[#allocation2 + $0x8] sm:$0xff] %vm139_vm0, %v794_v0  ;;  %v158_v3 = vld [vmem:[%s915_s30 + $0x18] sm:$0xff]  ;;  %v156_v4 = vld [vmem:[%s915_s30 + $0x8] sm:$0xff]  ;;  %s795_s17 = smov 127   ;;  %s796_s25 = smov 126  }
  0x37   : > { %142 = vst.msk [vmem:[#allocation2 + $0x18] sm:$0xff] %vm139_vm0, %v794_v0  ;;  %146 = vst.msk [vmem:[#allocation2 + $0x38] sm:$0xff] %vm139_vm0, %v794_v0  ;;  %v160_v5 = vld [vmem:[%s915_s30 + $0x28] sm:$0xff]  ;;  %v159_v6 = vld [vmem:[%s915_s30 + $0x20] sm:$0xff]  ;;  %s797_s27 = smov 125   ;;  %vm351_vm2 = vcmask 123904  }
  0x38   : > { %148 = vst.msk [vmem:[#allocation2 + $0x48] sm:$0xff] %vm139_vm0, %v794_v0  ;;  %150 = vst.msk [vmem:[#allocation2 + $0x58] sm:$0xff] %vm139_vm0, %v794_v0  ;;  %v162_v7 = vld [vmem:[%s915_s30 + $0x38] sm:$0xff]  ;;  %v161_v8 = vld [vmem:[%s915_s30 + $0x30] sm:$0xff]  ;;  %s798_s28 = smov 1   ;;  %vm413_vm3 = vcmask 7168  }
  0x39   : > { %152 = vst.msk [vmem:[#allocation2 + $0x68] sm:$0xff] %vm139_vm0, %v794_v0  ;;  %154 = vst.msk [vmem:[#allocation2 + $0x78] sm:$0xff] %vm139_vm0, %v794_v0  ;;  %s1021_s29 = scalar_lea.vmem [#allocation7], %s630_s24  ;;  %s641_s2 = sshll.u32 %s833_s10, 10 }
  0x3a   : > { %348 = vst.msk [vmem:[#allocation3] sm:$0xff] %vm163_vm1, %v794_v0  ;;  %349 = vst.msk [vmem:[#allocation3 + $0x8] sm:$0xff] %vm163_vm1, %v794_v0  ;;  %s549_s3 = sshll.u32 %s1021_s29, 4  ;;  %s1046_s11 = scalar_lea.hbm %s1096_s1, %s641_s2  ;;  %s1048_s3 = int_to_ptr.vmem [resolvable:$true] %s549_s3 }
  0x3b   : > { %350 = vst.msk [vmem:[#allocation3 + $0x10] sm:$0xff] %vm163_vm1, %v794_v0  ;;  %353 = vst.msk [vmem:[#allocation3 + $0x20] sm:$0xff] %vm163_vm1, %v794_v0  ;;  %s535_s10 = scalar_lea.sflag [#allocation6], %s909_s23  ;;  %s725_s13 = scalar_lea.vmem %s1048_s3, 1024 }
  0x3c   : > { %354 = vst.msk [vmem:[#allocation3 + $0x28] sm:$0xff] %vm163_vm1, %v794_v0  ;;  %355 = vst.msk [vmem:[#allocation3 + $0x30] sm:$0xff] %vm163_vm1, %v794_v0  ;;  %p726_p11 = scmp.ne.s32.totalorder %s1048_s3, %s725_s13  ;;  %p1105_p12 = scmp.ne.s32.totalorder %s1101_s18, 0 }
  0x3d   : > { %357 = vst.msk [vmem:[#allocation3 + $0x40] sm:$0xff] %vm163_vm1, %v794_v0  ;;  %358 = vst.msk [vmem:[#allocation3 + $0x48] sm:$0xff] %vm163_vm1, %v794_v0  ;;  %s799_s14 = smov [#allocation7]  }
  0x3e   : > { %359 = vst.msk [vmem:[#allocation3 + $0x50] sm:$0xff] %vm163_vm1, %v794_v0  ;;  %361 = vst.msk [vmem:[#allocation3 + $0x60] sm:$0xff] %vm163_vm1, %v794_v0  ;;  %p727_p13 = pnand %p726_p11, %p1105_p12  ;;  %s729_s16 = sshll.u32 %s799_s14, 4  ;;  %s730_s16 = int_to_ptr.vmem [resolvable:$false] %s729_s16 }
  0x3f   : > { %362 = vst.msk [vmem:[#allocation3 + $0x68] sm:$0xff] %vm163_vm1, %v794_v0  ;;  %363 = vst.msk [vmem:[#allocation3 + $0x70] sm:$0xff] %vm163_vm1, %v794_v0  ;;  %s731_s20 = scalar_lea.vmem %s730_s16, 2048  ;;  %p732_p5 = scmp.lt.s32.totalorder %s1048_s3, %s730_s16 }
  0x40   : > { %166 = vst.msk [vmem:[#allocation2 + $0x28] sm:$0xff] %vm163_vm1, %v157_v1  ;;  %164 = vst.msk [vmem:[#allocation2 + $0x8] sm:$0xff] %vm163_vm1, %v155_v2  ;;  %p728_p4 = pneg %p727_p13  ;;  %p733_p7 = scmp.lt.s32.totalorder %s731_s20, %s725_s13 }
  0x41   : > { %167 = vst.msk [vmem:[#allocation2 + $0x38] sm:$0xff] %vm163_vm1, %v158_v3  ;;  %165 = vst.msk [vmem:[#allocation2 + $0x18] sm:$0xff] %vm163_vm1, %v156_v4 }
  0x42   : > { %169 = vst.msk [vmem:[#allocation2 + $0x58] sm:$0xff] %vm163_vm1, %v160_v5  ;;  %168 = vst.msk [vmem:[#allocation2 + $0x48] sm:$0xff] %vm163_vm1, %v159_v6  ;;  %p734_p8 = por %p733_p7, %p732_p5 }
  0x43   : > { %171 = vst.msk [vmem:[#allocation2 + $0x78] sm:$0xff] %vm163_vm1, %v162_v7  ;;  %170 = vst.msk [vmem:[#allocation2 + $0x68] sm:$0xff] %vm163_vm1, %v161_v8 }
  0x44   : > { %352 = vst.msk [vmem:[#allocation3 + $0x18] sm:$0x3] %vm351_vm2, %v794_v0  ;;  %356 = vst.msk [vmem:[#allocation3 + $0x38] sm:$0x3] %vm351_vm2, %v794_v0  ;;  %p735_p10 = pnand %p734_p8, %p728_p4 }
  0x45   : > { %360 = vst.msk [vmem:[#allocation3 + $0x58] sm:$0x3] %vm351_vm2, %v794_v0  ;;  %364 = vst.msk [vmem:[#allocation3 + $0x78] sm:$0x3] %vm351_vm2, %v794_v0 }
  0x47   : > { %v177_v9 = vld [vmem:[#allocation2 + $0x28] sm:$0xff] }
  0x48   : > { %v173_v10 = vld [vmem:[#allocation2 + $0x8] sm:$0xff]  ;;  %v179_v11 = vld [vmem:[#allocation2 + $0x38] sm:$0xff]  ;;  %v206_v12 = vmul.f32 0.375, %v177_v9  ;;  %v193_v27 = vmul.f32 0.125, %v177_v9 }
  0x49   : > { %v204_v13 = vmul.f32 0.375, %v173_v10  ;;  %v175_v14 = vld [vmem:[#allocation2 + $0x18] sm:$0xff]  ;;  %v207_v15 = vmul.f32 0.375, %v179_v11  ;;  %v181_v18 = vld [vmem:[#allocation2 + $0x48] sm:$0xff]  ;;  %v189_v25 = vmul.f32 0.125, %v173_v10  ;;  %v195_v28 = vmul.f32 0.125, %v179_v11 }
  0x4a   : > { %224 = vrot.lane.b32.xlu1 %v206_v12, %s795_s17  ;;  %v205_v16 = vmul.f32 0.375, %v175_v14  ;;  %v183_v17 = vld [vmem:[#allocation2 + $0x58] sm:$0xff]  ;;  %v208_v20 = vmul.f32 0.375, %v181_v18  ;;  %v185_v22 = vld [vmem:[#allocation2 + $0x68] sm:$0xff]  ;;  %v191_v26 = vmul.f32 0.125, %v175_v14  ;;  %v197_v30 = vmul.f32 0.125, %v181_v18 }
  0x4b   : > { %220 = vrot.lane.b32.xlu0 %v204_v13, %s795_s17  ;;  %v209_v19 = vmul.f32 0.375, %v183_v17  ;;  %v187_v21 = vld [vmem:[#allocation2 + $0x78] sm:$0xff]  ;;  %v210_v24 = vmul.f32 0.375, %v185_v22  ;;  %v969_v29 = vmul.f32 0.125, %v183_v17  ;;  %v974_v32 = vmul.f32 0.125, %v185_v22 }
  0x4c   : > { %v211_v23 = vmul.f32 0.375, %v187_v21  ;;  %v972_v31 = vmul.f32 0.125, %v187_v21 }
  0x4e   : > { %226 = vrot.lane.b32.xlu1 %v207_v15, %s795_s17 }
  0x4f   : > { %222 = vrot.lane.b32.xlu0 %v205_v16, %s795_s17 }
  0x52   : > { %230 = vrot.lane.b32.xlu1 %v209_v19, %s795_s17 }
  0x53   : > { %228 = vrot.lane.b32.xlu0 %v208_v20, %s795_s17 }
  0x56   : > { %234 = vrot.lane.b32.xlu1 %v211_v23, %s795_s17 }
  0x57   : > { %232 = vrot.lane.b32.xlu0 %v210_v24, %s795_s17 }
  0x5a   : > { %262 = vrot.lane.b32.xlu1 %v205_v16, %s796_s25 }
  0x5b   : > { %260 = vrot.lane.b32.xlu0 %v204_v13, %s796_s25 }
  0x5e   : > { %266 = vrot.lane.b32.xlu1 %v207_v15, %s796_s25 }
  0x5f   : > { %264 = vrot.lane.b32.xlu0 %v206_v12, %s796_s25 }
  0x62   : > { %270 = vrot.lane.b32.xlu1 %v209_v19, %s796_s25 }
  0x63   : > { %268 = vrot.lane.b32.xlu0 %v208_v20, %s796_s25 }
  0x66   : > { %274 = vrot.lane.b32.xlu1 %v211_v23, %s796_s25 }
  0x67   : > { %272 = vrot.lane.b32.xlu0 %v210_v24, %s796_s25 }
  0x6a   : > { %310 = vrot.lane.b32.xlu1 %v191_v26, %s797_s27 }
  0x6b   : > { %308 = vrot.lane.b32.xlu0 %v189_v25, %s797_s27 }
  0x6e   : > { %314 = vrot.lane.b32.xlu1 %v195_v28, %s797_s27 }
  0x6f   : > { %312 = vrot.lane.b32.xlu0 %v193_v27, %s797_s27 }
  0x72   : > { %318 = vrot.lane.b32.xlu1 %v969_v29, %s797_s27 }
  0x73   : > { %316 = vrot.lane.b32.xlu0 %v197_v30, %s797_s27 }
  0x76   : > { %322 = vrot.lane.b32.xlu1 %v972_v31, %s797_s27 }
  0x77   : > { %320 = vrot.lane.b32.xlu0 %v974_v32, %s797_s27 }
  0xbc   : > { %v225_v33 = vpop.permute.xlu1 %224 }
  0xbd   : > { %v221_v34 = vpop.permute.xlu0 %220  ;;  %v249_v59 = vadd.f32 %v225_v33, %v193_v27 }
  0xbe   : > { %v245_v49 = vadd.f32 %v221_v34, %v189_v25 }
  0xc0   : > { %v227_v35 = vpop.permute.xlu1 %226 }
  0xc1   : > { %v223_v36 = vpop.permute.xlu0 %222  ;;  %v251_v1 = vadd.f32 %v227_v35, %v195_v28 }
  0xc2   : > { %v247_v53 = vadd.f32 %v223_v36, %v191_v26 }
  0xc4   : > { %v231_v37 = vpop.permute.xlu1 %230 }
  0xc5   : > { %v229_v38 = vpop.permute.xlu0 %228  ;;  %v255_v13 = vadd.f32 %v231_v37, %v969_v29 }
  0xc6   : > { %v253_v7 = vadd.f32 %v229_v38, %v197_v30 }
  0xc8   : > { %v978_v39 = vpop.permute.xlu1 %234 }
  0xc9   : > { %v980_v40 = vpop.permute.xlu0 %232  ;;  %v259_v25 = vadd.f32 %v978_v39, %v972_v31 }
  0xca   : > { %v257_v19 = vadd.f32 %v980_v40, %v974_v32 }
  0xcc   : > { %v263_v41 = vpop.permute.xlu1 %262 }
  0xcd   : > { %v261_v42 = vpop.permute.xlu0 %260  ;;  %v286_v57 = vadd.f32 %v263_v41, %v223_v36  ;;  %v287_v58 = vadd.f32 %v263_v41, %v247_v53 }
  0xce   : > { %v284_v50 = vadd.f32 %v261_v42, %v221_v34  ;;  %v285_v51 = vadd.f32 %v261_v42, %v245_v49 }
  0xd0   : > { %v267_v43 = vpop.permute.xlu1 %266 }
  0xd1   : > { %v265_v44 = vpop.permute.xlu0 %264  ;;  %v290_v5 = vadd.f32 %v267_v43, %v227_v35  ;;  %v291_v6 = vadd.f32 %v267_v43, %v251_v1 }
  0xd2   : > { %v288_v63 = vadd.f32 %v265_v44, %v225_v33  ;;  %v289_v0 = vadd.f32 %v265_v44, %v249_v59 }
  0xd4   : > { %v271_v45 = vpop.permute.xlu1 %270 }
  0xd5   : > { %v269_v46 = vpop.permute.xlu0 %268  ;;  %v294_v17 = vadd.f32 %v271_v45, %v231_v37  ;;  %v295_v18 = vadd.f32 %v271_v45, %v255_v13 }
  0xd6   : > { %v292_v11 = vadd.f32 %v269_v46, %v229_v38  ;;  %v293_v12 = vadd.f32 %v269_v46, %v253_v7 }
  0xd8   : > { %v275_v47 = vpop.permute.xlu1 %274 }
  0xd9   : > { %v273_v48 = vpop.permute.xlu0 %272  ;;  %v298_v29 = vadd.f32 %v275_v47, %v978_v39  ;;  %v299_v30 = vadd.f32 %v275_v47, %v259_v25 }
  0xda   : > { %v296_v23 = vadd.f32 %v273_v48, %v980_v40  ;;  %v297_v24 = vadd.f32 %v273_v48, %v257_v19 }
  0xdc   : > { %v311_v56 = vpop.permute.xlu1 %310 }
  0xdd   : > { %v309_v52 = vpop.permute.xlu0 %308  ;;  %v334_v60 = vadd.f32 %v311_v56, %v286_v57  ;;  %v335_v61 = vadd.f32 %v311_v56, %v287_v58 }
  0xde   : > { %v332_v54 = vadd.f32 %v309_v52, %v284_v50  ;;  %v333_v55 = vadd.f32 %v309_v52, %v285_v51 }
  0xe0   : > { %383 = vrot.lane.b32.xlu1 %v333_v55, %s798_s28  ;;  %381 = vrot.lane.b32.xlu0 %v332_v54, %s798_s28  ;;  %v315_v4 = vpop.permute.xlu1 %314 }
  0xe1   : > { %v313_v62 = vpop.permute.xlu0 %312  ;;  %v338_v8 = vadd.f32 %v315_v4, %v290_v5  ;;  %v339_v9 = vadd.f32 %v315_v4, %v291_v6 }
  0xe2   : > { %v336_v2 = vadd.f32 %v313_v62, %v288_v63  ;;  %v337_v3 = vadd.f32 %v313_v62, %v289_v0 }
  0xe4   : > { %387 = vrot.lane.b32.xlu1 %v335_v61, %s798_s28  ;;  %385 = vrot.lane.b32.xlu0 %v334_v60, %s798_s28  ;;  %v319_v16 = vpop.permute.xlu1 %318 }
  0xe5   : > { %v317_v10 = vpop.permute.xlu0 %316  ;;  %v342_v20 = vadd.f32 %v319_v16, %v294_v17  ;;  %v343_v21 = vadd.f32 %v319_v16, %v295_v18 }
  0xe6   : > { %v340_v14 = vadd.f32 %v317_v10, %v292_v11  ;;  %v341_v15 = vadd.f32 %v317_v10, %v293_v12 }
  0xe8   : > { %391 = vrot.lane.b32.xlu1 %v337_v3, %s798_s28  ;;  %389 = vrot.lane.b32.xlu0 %v336_v2, %s798_s28  ;;  %v323_v28 = vpop.permute.xlu1 %322 }
  0xe9   : > { %v321_v22 = vpop.permute.xlu0 %320  ;;  %v346_v32 = vadd.f32 %v323_v28, %v298_v29  ;;  %v347_v33 = vadd.f32 %v323_v28, %v299_v30 }
  0xea   : > { %v344_v26 = vadd.f32 %v321_v22, %v296_v23  ;;  %v345_v27 = vadd.f32 %v321_v22, %v297_v24 }
  0xec   : > { %395 = vrot.lane.b32.xlu1 %v339_v9, %s798_s28  ;;  %393 = vrot.lane.b32.xlu0 %v338_v8, %s798_s28 }
  0xf0   : > { %399 = vrot.lane.b32.xlu1 %v341_v15, %s798_s28  ;;  %397 = vrot.lane.b32.xlu0 %v340_v14, %s798_s28 }
  0xf4   : > { %403 = vrot.lane.b32.xlu1 %v343_v21, %s798_s28  ;;  %401 = vrot.lane.b32.xlu0 %v342_v20, %s798_s28 }
  0xf8   : > { %407 = vrot.lane.b32.xlu1 %v345_v27, %s798_s28  ;;  %405 = vrot.lane.b32.xlu0 %v344_v26, %s798_s28 }
  0xfc   : > { %411 = vrot.lane.b32.xlu1 %v347_v33, %s798_s28  ;;  %409 = vrot.lane.b32.xlu0 %v346_v32, %s798_s28 }
 0x152   : > { %v384_v34 = vpop.permute.xlu1 %383  ;;  %v382_v35 = vpop.permute.xlu0 %381 }
 0x153   : > { %v414_v31 = vsel %vm413_vm3, %v382_v35, %v384_v34 }
 0x154   : > { %430 = vst.msk [vmem:[#allocation3 + $0x8] sm:$0xff] %vm163_vm1, %v414_v31 }
 0x156   : > { %v388_v36 = vpop.permute.xlu1 %387  ;;  %v386_v37 = vpop.permute.xlu0 %385 }
 0x157   : > { %v415_v38 = vsel %vm413_vm3, %v386_v37, %v388_v36 }
 0x158   : > { %431 = vst.msk [vmem:[#allocation3 + $0x10] sm:$0xff] %vm163_vm1, %v415_v38 }
 0x15a   : > { %v392_v39 = vpop.permute.xlu1 %391  ;;  %v390_v40 = vpop.permute.xlu0 %389 }
 0x15b   : > { %v438_v41 = vld [vmem:[#allocation3 + $0x7] sm:$0xff]  ;;  %v416_v43 = vsel %vm413_vm3, %v390_v40, %v392_v39 }
 0x15c   : > { %v454_v42 = vld [vmem:[#allocation3 + $0x8] sm:$0xff]  ;;  %v446_v44 = vmul.f32 0.125, %v438_v41  ;;  %432 = vst.msk [vmem:[#allocation3 + $0x28] sm:$0xff] %vm163_vm1, %v416_v43 }
 0x15d   : > { %v462_v45 = vmul.f32 0.375, %v454_v42 }
 0x15e   : > { %v396_v46 = vpop.permute.xlu1 %395  ;;  %v394_v47 = vpop.permute.xlu0 %393 }
 0x15f   : > { %v439_v48 = vld [vmem:[#allocation3 + $0xf] sm:$0xff]  ;;  %v417_v51 = vsel %vm413_vm3, %v394_v47, %v396_v46  ;;  %v470_v52 = vadd.f32 %v462_v45, %v446_v44 }
 0x160   : > { %v455_v49 = vld [vmem:[#allocation3 + $0x10] sm:$0xff]  ;;  %v447_v53 = vmul.f32 0.125, %v439_v48  ;;  %433 = vst.msk [vmem:[#allocation3 + $0x30] sm:$0xff] %vm163_vm1, %v417_v51 }
 0x161   : > { %v478_v50 = vld [vmem:[#allocation3 + $0x9] sm:$0xff]  ;;  %v463_v54 = vmul.f32 0.375, %v455_v49  ;;  %v479_v55 = vld [vmem:[#allocation3 + $0x11] sm:$0xff] }
 0x162   : > { %v486_v56 = vmul.f32 0.375, %v478_v50  ;;  %v502_v57 = vld [vmem:[#allocation3 + $0xa] sm:$0xff]  ;;  %v503_v58 = vld [vmem:[#allocation3 + $0x12] sm:$0xff]  ;;  %v487_v60 = vmul.f32 0.375, %v479_v55  ;;  %v400_v63 = vpop.permute.xlu1 %399  ;;  %v398_v0 = vpop.permute.xlu0 %397 }
 0x163   : > { %v471_v59 = vadd.f32 %v463_v54, %v447_v53  ;;  %v510_v62 = vmul.f32 0.125, %v502_v57  ;;  %v511_v1 = vmul.f32 0.125, %v503_v58  ;;  %v440_v2 = vld [vmem:[#allocation3 + $0x27] sm:$0xff]  ;;  %v418_v4 = vsel %vm413_vm3, %v398_v0, %v400_v63 }
 0x164   : > { %v494_v61 = vadd.f32 %v486_v56, %v470_v52  ;;  %v456_v3 = vld [vmem:[#allocation3 + $0x28] sm:$0xff]  ;;  %v448_v7 = vmul.f32 0.125, %v440_v2  ;;  %434 = vst.msk [vmem:[#allocation3 + $0x48] sm:$0xff] %vm163_vm1, %v418_v4 }
 0x165   : > { %v495_v5 = vadd.f32 %v487_v60, %v471_v59  ;;  %v464_v8 = vmul.f32 0.375, %v456_v3 }
 0x166   : > { %v518_v6 = vadd.f32 %v510_v62, %v494_v61  ;;  %v404_v10 = vpop.permute.xlu1 %403  ;;  %v402_v11 = vpop.permute.xlu0 %401 }
 0x167   : > { %v519_v9 = vadd.f32 %v511_v1, %v495_v5  ;;  %v441_v12 = vld [vmem:[#allocation3 + $0x2f] sm:$0xff]  ;;  %v419_v15 = vsel %vm413_vm3, %v402_v11, %v404_v10  ;;  %v472_v16 = vadd.f32 %v464_v8, %v448_v7 }
 0x168   : > { %526 = vst.msk [vmem:[%s1021_s29] sm:$0xff] %vm163_vm1, %v518_v6  ;;  %v457_v13 = vld [vmem:[#allocation3 + $0x30] sm:$0xff]  ;;  %v449_v17 = vmul.f32 0.125, %v441_v12  ;;  %435 = vst.msk [vmem:[#allocation3 + $0x50] sm:$0xff] %vm163_vm1, %v419_v15 }
 0x169   : > { %v480_v14 = vld [vmem:[#allocation3 + $0x29] sm:$0xff]  ;;  %527 = vst.msk [vmem:[%s1021_s29 + $0x8] sm:$0xff] %vm163_vm1, %v519_v9  ;;  %v465_v18 = vmul.f32 0.375, %v457_v13  ;;  %v481_v19 = vld [vmem:[#allocation3 + $0x31] sm:$0xff] }
 0x16a   : > { %v488_v20 = vmul.f32 0.375, %v480_v14  ;;  %v504_v21 = vld [vmem:[#allocation3 + $0x2a] sm:$0xff]  ;;  %v505_v22 = vld [vmem:[#allocation3 + $0x32] sm:$0xff]  ;;  %v489_v24 = vmul.f32 0.375, %v481_v19  ;;  %v408_v27 = vpop.permute.xlu1 %407  ;;  %v406_v28 = vpop.permute.xlu0 %405 }
 0x16b   : > { %v473_v23 = vadd.f32 %v465_v18, %v449_v17  ;;  %v512_v26 = vmul.f32 0.125, %v504_v21  ;;  %v513_v29 = vmul.f32 0.125, %v505_v22  ;;  %v442_v30 = vld [vmem:[#allocation3 + $0x47] sm:$0xff]  ;;  %v420_v33 = vsel %vm413_vm3, %v406_v28, %v408_v27 }
 0x16c   : > { %v496_v25 = vadd.f32 %v488_v20, %v472_v16  ;;  %v458_v32 = vld [vmem:[#allocation3 + $0x48] sm:$0xff]  ;;  %v450_v31 = vmul.f32 0.125, %v442_v30  ;;  %436 = vst.msk [vmem:[#allocation3 + $0x68] sm:$0xff] %vm163_vm1, %v420_v33 }
 0x16d   : > { %v497_v34 = vadd.f32 %v489_v24, %v473_v23  ;;  %v466_v36 = vmul.f32 0.375, %v458_v32 }
 0x16e   : > { %v520_v35 = vadd.f32 %v512_v26, %v496_v25  ;;  %v412_v38 = vpop.permute.xlu1 %411  ;;  %v410_v39 = vpop.permute.xlu0 %409 }
 0x16f   : > { %v521_v37 = vadd.f32 %v513_v29, %v497_v34  ;;  %v443_v40 = vld [vmem:[#allocation3 + $0x4f] sm:$0xff]  ;;  %v421_v43 = vsel %vm413_vm3, %v410_v39, %v412_v38  ;;  %v474_v44 = vadd.f32 %v466_v36, %v450_v31 }
 0x170   : > { %528 = vst.msk [vmem:[%s1021_s29 + $0x10] sm:$0xff] %vm163_vm1, %v520_v35  ;;  %v459_v41 = vld [vmem:[#allocation3 + $0x50] sm:$0xff]  ;;  %v451_v45 = vmul.f32 0.125, %v443_v40  ;;  %437 = vst.msk [vmem:[#allocation3 + $0x70] sm:$0xff] %vm163_vm1, %v421_v43 }
 0x171   : > { %v482_v42 = vld [vmem:[#allocation3 + $0x49] sm:$0xff]  ;;  %529 = vst.msk [vmem:[%s1021_s29 + $0x18] sm:$0xff] %vm163_vm1, %v521_v37  ;;  %v467_v46 = vmul.f32 0.375, %v459_v41  ;;  %v483_v47 = vld [vmem:[#allocation3 + $0x51] sm:$0xff] }
 0x172   : > { %v490_v48 = vmul.f32 0.375, %v482_v42  ;;  %v506_v49 = vld [vmem:[#allocation3 + $0x4a] sm:$0xff]  ;;  %v507_v50 = vld [vmem:[#allocation3 + $0x52] sm:$0xff]  ;;  %v491_v52 = vmul.f32 0.375, %v483_v47 }
 0x173   : > { %v475_v51 = vadd.f32 %v467_v46, %v451_v45  ;;  %v514_v54 = vmul.f32 0.125, %v506_v49  ;;  %v515_v55 = vmul.f32 0.125, %v507_v50  ;;  %v444_v56 = vld [vmem:[#allocation3 + $0x67] sm:$0xff] }
 0x174   : > { %v498_v53 = vadd.f32 %v490_v48, %v474_v44  ;;  %v460_v57 = vld [vmem:[#allocation3 + $0x68] sm:$0xff]  ;;  %v452_v60 = vmul.f32 0.125, %v444_v56 }
 0x175   : > { %v499_v58 = vadd.f32 %v491_v52, %v475_v51  ;;  %v468_v61 = vmul.f32 0.375, %v460_v57 }
 0x176   : > { %v522_v59 = vadd.f32 %v514_v54, %v498_v53 }
 0x177   : > { %v523_v62 = vadd.f32 %v515_v55, %v499_v58  ;;  %v445_v63 = vld [vmem:[#allocation3 + $0x6f] sm:$0xff]  ;;  %v476_v2 = vadd.f32 %v468_v61, %v452_v60 }
 0x178   : > { %530 = vst.msk [vmem:[%s1021_s29 + $0x20] sm:$0xff] %vm163_vm1, %v522_v59  ;;  %v461_v0 = vld [vmem:[#allocation3 + $0x70] sm:$0xff]  ;;  %v453_v3 = vmul.f32 0.125, %v445_v63 }
 0x179   : > { %v484_v1 = vld [vmem:[#allocation3 + $0x69] sm:$0xff]  ;;  %531 = vst.msk [vmem:[%s1021_s29 + $0x28] sm:$0xff] %vm163_vm1, %v523_v62  ;;  %v469_v4 = vmul.f32 0.375, %v461_v0  ;;  %v485_v5 = vld [vmem:[#allocation3 + $0x71] sm:$0xff] }
 0x17a   : > { %v492_v6 = vmul.f32 0.375, %v484_v1  ;;  %v508_v7 = vld [vmem:[#allocation3 + $0x6a] sm:$0xff]  ;;  %v509_v8 = vld [vmem:[#allocation3 + $0x72] sm:$0xff]  ;;  %v493_v10 = vmul.f32 0.375, %v485_v5 }
 0x17b   : > { %v477_v9 = vadd.f32 %v469_v4, %v453_v3  ;;  %v516_v12 = vmul.f32 0.125, %v508_v7  ;;  %v517_v14 = vmul.f32 0.125, %v509_v8 }
 0x17c   : > { %v500_v11 = vadd.f32 %v492_v6, %v476_v2 }
 0x17d   : > { %v501_v13 = vadd.f32 %v493_v10, %v477_v9 }
 0x17e   : > { %v524_v15 = vadd.f32 %v516_v12, %v500_v11 }
 0x17f   : > { %v525_v16 = vadd.f32 %v517_v14, %v501_v13 }
 0x180   : > { %532 = vst.msk [vmem:[%s1021_s29 + $0x30] sm:$0xff] %vm163_vm1, %v524_v15 }
 0x181   : > { %533 = vst.msk [vmem:[%s1021_s29 + $0x38] sm:$0xff] %vm163_vm1, %v525_v16 }
 0x182   : > { %738 = shalt.err (!%p735_p10)
}
 0x183   : > { %s739_s21 = scalar_lea.hbm %s1046_s11, 1024  ;;  %s743_s26 = scalar_lea.hbm %s1096_s1, 2048 }
 0x184   : > { %p740_p0 = scmp.ne.s32.totalorder %s1046_s11, %s739_s21  ;;  %p744_p1 = scmp.lt.s32.totalorder %s1046_s11, %s1096_s1 }
 0x185   : > { %p745_p3 = scmp.lt.s32.totalorder %s743_s26, %s739_s21 }
 0x186   : > { %p741_p2 = pnand %p740_p0, %p1105_p12 }
 0x187   : > { %p746_p6 = por %p745_p3, %p744_p1 }
 0x188   : > { %p742_p9 = pneg %p741_p2 }
 0x18a   : > { %p747_p11 = pnand %p746_p6, %p742_p9 }
 0x18c   : > { %750 = shalt.err (!%p747_p11)
}
 0x18d   : > { %s800_s25 = smov 128   ;;  %s801_s27 = smov 8  }
 0x18e   : > { %644 = dma.vmem_to_hbm [thread:$0]  (%p1105_p12), %s1048_s3, 1024, %s1046_s11, %s535_s10, %s800_s25, %s800_s25, %s801_s27  }
 0x18f PF: > { %s564_s28 = sand.u32 1, %s777_s6   ;;  %p1106_p13 = scmp.ne.s32.totalorder %s1102_s19, 0 }
 0x190   : > { %p1107_p4 = scmp.ge.s32.totalorder %s789_s9, 2  ;;  %s565_s29 = scalar_lea.sflag [#allocation6], %s564_s28 }
 0x192   : > { %p651_p5 = pnand %p1107_p4, %p1106_p13 }
 0x194   : > { %p652_p7 = pneg %p651_p5 }
 0x196   : > { %772 = dma.done.wait (%p652_p7), %s565_s29, 1024  }
 0x197   : > { %774 = vsyncadd (%p652_p7), %s565_s29, 4294966272  ;;  %p14_p8 = scmp.ge.s32.totalorder %s837_s12, 4   ;;  %s1108_s6 = smov %s781_s7 }
 0x198   : > { %s1109_s7 = smov %s785_s8  ;;  %s1110_s8 = smov %s849_s15 }
 0x199   : > { %s1111_s9 = smov %s837_s12  ;;  %16 = sbr.rel (!%p14_p8) target bundleno = 5 (0x5), region = 69 }
 0x19e   :  { %570 = vsyncpa [#allocation5], 1 }
 0x19f   :  { %572 = vsyncpa [#allocation5 + $0x1], 1 }
 0x1a0   :  { %573 = vsyncpa [#allocation6], 1 }
 0x1a1   :  { %575 = vsyncpa [#allocation6 + $0x1], 1 }

</bundles_post_ra>
